<compile_context>
chip_gen: v7x
topology: tpu7x:2x2x1
jax: 0.10.0
libtpu: 0.0.40
codegen_flags: <defaults>
</compile_context>

<pallas_src>
import functools
import numpy as np

import jax
import jax.numpy as jnp
from jax.experimental import pallas as pl
from jax.experimental.pallas import tpu as pltpu

BN_EPS = 1e-3  # torchvision EfficientNet uses BatchNorm2d(eps=1e-3)
_VMEM_LIMIT = 48 * 1024 * 1024  # > 16/32 MiB scoped defaults, < v7x 64 MiB physical


def _round_up(x, m):
    return (x + m - 1) // m * m


def _largest_divisor(n, cap):
    cap = max(1, min(n, cap))
    for d in range(cap, 0, -1):
        if n % d == 0:
            return d
    return 1


def _largest_divisor_mult(n, cap, mult):
    d = (min(n, cap) // mult) * mult
    while d >= mult:
        if n % d == 0:
            return d
        d -= mult
    return None


# ----------------------------- Pallas kernels ------------------------------

def _apply_act(x, act):
    if act == "silu":
        return x * jax.nn.sigmoid(x)
    if act == "sigmoid":
        return jax.nn.sigmoid(x)
    return x


def _mm_kernel(a_ref, w_ref, b_ref, o_ref, *, act):
    # a (tm, K) bf16, w (K, tn) bf16, f32 accumulate, f32 epilogue, bf16 store.
    acc = jnp.dot(a_ref[...], w_ref[...], preferred_element_type=jnp.float32)
    acc = acc + b_ref[...]
    o_ref[...] = _apply_act(acc, act).astype(o_ref.dtype)


def pallas_matmul(a, w, b, act="none", budget=4 * 1024 * 1024, cap=1024):
    """(M,K)bf16 @ (K,Np)bf16 + f32 bias, fused activation, bf16 output.

    M tile is a divisor of M (multiple of 8) picked from a VMEM budget, so no
    activation padding copy is needed in the common case.
    """
    M, K = a.shape
    Kw, Np = w.shape
    assert K == Kw, (K, Kw)
    tn = 256 if (Np % 256 == 0 and Np >= 256) else 128
    capm = min(cap, max(8, (budget // (K * 2)) // 8 * 8))
    if M <= capm:
        tm, Mp = M, M
    else:
        d = _largest_divisor_mult(M, capm, 8)
        if d is not None:
            tm, Mp = d, M
        else:  # fallback (never hit for this network)
            tm = capm
            Mp = _round_up(M, tm)
    a_p = a if Mp == M else jnp.pad(a, ((0, Mp - M), (0, 0)))
    out = pl.pallas_call(
        functools.partial(_mm_kernel, act=act),
        out_shape=jax.ShapeDtypeStruct((Mp, Np), jnp.bfloat16),
        grid_spec=pltpu.PrefetchScalarGridSpec(
            num_scalar_prefetch=0,
            grid=(Mp // tm, Np // tn),
            in_specs=[
                pl.BlockSpec((tm, K), lambda i, j: (i, 0)),
                pl.BlockSpec((K, tn), lambda i, j: (0, j)),
                pl.BlockSpec((1, tn), lambda i, j: (0, j)),
            ],
            out_specs=pl.BlockSpec((tm, tn), lambda i, j: (i, j)),
        ),
        compiler_params=pltpu.CompilerParams(
            dimension_semantics=("parallel", "arbitrary"),
            vmem_limit_bytes=_VMEM_LIMIT),
    )(a_p, w, b)
    return out if Mp == M else out[:M]


def _proj_kernel(a_ref, s_ref, w_ref, b_ref, *rest, has_res):
    # a (thw, Kp) bf16, s (Kp, 1) f32 SE scale, w (Kp, tn) bf16, b (1, tn) f32,
    # optional residual r (thw, tn) bf16.  SE scale applied to the WEIGHT tile.
    if has_res:
        r_ref, o_ref = rest
    else:
        (o_ref,) = rest
    w = (w_ref[...].astype(jnp.float32) * s_ref[...]).astype(jnp.bfloat16)
    acc = jnp.dot(a_ref[...], w, preferred_element_type=jnp.float32)
    acc = acc + b_ref[...]
    if has_res:
        acc = acc + r_ref[...].astype(jnp.float32)
    o_ref[...] = acc.astype(o_ref.dtype)


def pallas_proj_se(a3, s_col, w, b, res3=None, hw_cap=2048):
    """Projection 1x1 conv with fused SE channel-scale and optional residual.

    a3: (N, HW, Kp) bf16, s_col: (N, Kp, 1) f32, w: (Kp, Np) bf16,
    b: (1, Np) f32, res3: (N, HW, Np) bf16 or None.  Returns (N, HW, Np) bf16.
    The HW axis is tiled (divisor-based) for VMEM safety at real resolutions.
    """
    N, HW, Kp = a3.shape
    _, Np = w.shape
    tn = 256 if (Np % 256 == 0 and Np >= 256) else 128
    if HW <= hw_cap:
        thw = HW
    else:
        d = _largest_divisor_mult(HW, hw_cap, 8)
        thw = d if d is not None else HW
    in_specs = [
        pl.BlockSpec((None, thw, Kp), lambda n, h, j: (n, h, 0)),
        pl.BlockSpec((None, Kp, 1), lambda n, h, j: (n, 0, 0)),
        pl.BlockSpec((Kp, tn), lambda n, h, j: (0, j)),
        pl.BlockSpec((1, tn), lambda n, h, j: (0, j)),
    ]
    args = [a3, s_col, w, b]
    if res3 is not None:
        in_specs.append(pl.BlockSpec((None, thw, tn), lambda n, h, j: (n, h, j)))
        args.append(res3)
    return pl.pallas_call(
        functools.partial(_proj_kernel, has_res=res3 is not None),
        out_shape=jax.ShapeDtypeStruct((N, HW, Np), jnp.bfloat16),
        grid_spec=pltpu.PrefetchScalarGridSpec(
            num_scalar_prefetch=0,
            grid=(N, HW // thw, Np // tn),
            in_specs=in_specs,
            out_specs=pl.BlockSpec((None, thw, tn), lambda n, h, j: (n, h, j)),
        ),
        compiler_params=pltpu.CompilerParams(
            dimension_semantics=("parallel", "parallel", "arbitrary"),
            vmem_limit_bytes=_VMEM_LIMIT),
    )(*args)


def _dw_kernel(x_ref, w_ref, b_ref, o_ref, *, k, stride, hs, act):
    # Direct depthwise conv.  x holds the padded image (stride 1) or its four
    # parity sub-images stacked along rows (stride 2), resident per image.
    # Each of the k*k taps is a contiguous (th, Wo, Cp) slice FMA'd into acc.
    th, Wo, _ = o_ref.shape
    row0 = pl.program_id(1) * th
    acc = None
    for di in range(k):
        for dj in range(k):
            sub = (di % stride) * stride + (dj % stride)
            rs = sub * hs + row0 + di // stride
            cs = dj // stride
            tap = x_ref[pl.ds(rs, th), pl.ds(cs, Wo), :].astype(jnp.float32)
            term = tap * w_ref[di * k + dj, :]
            acc = term if acc is None else acc + term
    acc = acc + b_ref[...]
    o_ref[...] = _apply_act(acc, act).astype(o_ref.dtype)


def dwconv(x, w, b, stride, pad, act="silu", row_budget=2 * 1024 * 1024):
    """Depthwise k x k conv + BN (folded) + SiLU, directly in Pallas.

    x: (N, H, W, Cp) bf16; w: (k*k, Cp) f32; b: (1, Cp) f32.
    stride 2 uses an even/odd parity decomposition (built once in XLA, same
    total size as the input) so all in-kernel tap reads are contiguous.
    """
    N, H, W, Cp = x.shape
    KK = w.shape[0]
    k = int(round(KK ** 0.5))
    xp = jnp.pad(x, ((0, 0), (pad, pad), (pad, pad), (0, 0)))
    Hp, Wp = H + 2 * pad, W + 2 * pad
    Ho = (Hp - k) // stride + 1
    Wo = (Wp - k) // stride + 1
    if stride == 1:
        xs = xp
        Hs, Ws = Hp, Wp
    else:
        Hs, Ws = (Hp + 1) // 2, (Wp + 1) // 2
        subs = []
        for pr in range(2):
            for pc in range(2):
                sub = xp[:, pr::2, pc::2, :]
                ph, pw = Hs - sub.shape[1], Ws - sub.shape[2]
                if ph or pw:
                    sub = jnp.pad(sub, ((0, 0), (0, ph), (0, pw), (0, 0)))
                subs.append(sub)
        xs = jnp.concatenate(subs, axis=1)          # (N, 4*Hs, Ws, Cp)
    HT = xs.shape[1]
    cap = max(1, row_budget // (Wo * Cp * 4))
    th = _largest_divisor(Ho, cap)
    out = pl.pallas_call(
        functools.partial(_dw_kernel, k=k, stride=stride, hs=Hs, act=act),
        out_shape=jax.ShapeDtypeStruct((N, Ho, Wo, Cp), jnp.bfloat16),
        grid_spec=pltpu.PrefetchScalarGridSpec(
            num_scalar_prefetch=0,
            grid=(N, Ho // th),
            in_specs=[
                pl.BlockSpec((None, HT, Ws, Cp), lambda n, t: (n, 0, 0, 0)),
                pl.BlockSpec((KK, Cp), lambda n, t: (0, 0)),
                pl.BlockSpec((1, Cp), lambda n, t: (0, 0)),
            ],
            out_specs=pl.BlockSpec((None, th, Wo, Cp), lambda n, t: (n, t, 0, 0)),
        ),
        compiler_params=pltpu.CompilerParams(
            dimension_semantics=("parallel", "arbitrary"),
            vmem_limit_bytes=_VMEM_LIMIT),
    )(xs, w, b)
    return out


def _se_kernel(x_ref, w1_ref, b1_ref, w2_ref, b2_ref, o_ref):
    # Fused Squeeze-Excitation: GAP -> FC1+SiLU -> FC2+sigmoid, per image.
    pooled = jnp.mean(x_ref[...].astype(jnp.float32), axis=0, keepdims=True)
    h = jnp.dot(pooled.astype(jnp.bfloat16), w1_ref[...],
                preferred_element_type=jnp.float32) + b1_ref[...]
    h = h * jax.nn.sigmoid(h)
    s = jnp.dot(h.astype(jnp.bfloat16), w2_ref[...],
                preferred_element_type=jnp.float32) + b2_ref[...]
    o_ref[...] = jax.nn.sigmoid(s)


def pallas_se(x3, w1, b1, w2, b2):
    """x3: (N, HW, Cep) bf16 -> SE scale (N, Cep) f32 (one kernel per image)."""
    N, HW, Cep = x3.shape
    sqp = w1.shape[1]
    return pl.pallas_call(
        _se_kernel,
        out_shape=jax.ShapeDtypeStruct((N, Cep), jnp.float32),
        grid_spec=pltpu.PrefetchScalarGridSpec(
            num_scalar_prefetch=0,
            grid=(N,),
            in_specs=[
                pl.BlockSpec((None, HW, Cep), lambda n: (n, 0, 0)),
                pl.BlockSpec((Cep, sqp), lambda n: (0, 0)),
                pl.BlockSpec((1, sqp), lambda n: (0, 0)),
                pl.BlockSpec((sqp, Cep), lambda n: (0, 0)),
                pl.BlockSpec((1, Cep), lambda n: (0, 0)),
            ],
            out_specs=pl.BlockSpec((1, Cep), lambda n: (n, 0)),
        ),
        compiler_params=pltpu.CompilerParams(
            dimension_semantics=("parallel",),
            vmem_limit_bytes=_VMEM_LIMIT),
    )(x3, w1, b1, w2, b2)


def _gap_fc_kernel(x_ref, w_ref, b_ref, o_ref):
    # Fused global average pool + classifier Linear (per image).
    pooled = jnp.mean(x_ref[...].astype(jnp.float32), axis=0, keepdims=True)
    o_ref[...] = jnp.dot(pooled.astype(jnp.bfloat16), w_ref[...],
                         preferred_element_type=jnp.float32) + b_ref[...]


def pallas_gap_fc(x3, w, b):
    """x3: (N, HW, C) bf16, w: (C, Np) bf16, b: (1, Np) f32 -> (N, Np) f32."""
    N, HW, C = x3.shape
    Np = w.shape[1]
    return pl.pallas_call(
        _gap_fc_kernel,
        out_shape=jax.ShapeDtypeStruct((N, Np), jnp.float32),
        grid_spec=pltpu.PrefetchScalarGridSpec(
            num_scalar_prefetch=0,
            grid=(N,),
            in_specs=[
                pl.BlockSpec((None, HW, C), lambda n: (n, 0, 0)),
                pl.BlockSpec((C, Np), lambda n: (0, 0)),
                pl.BlockSpec((1, Np), lambda n: (0, 0)),
            ],
            out_specs=pl.BlockSpec((1, Np), lambda n: (n, 0)),
        ),
        compiler_params=pltpu.CompilerParams(
            dimension_semantics=("parallel",),
            vmem_limit_bytes=_VMEM_LIMIT),
    )(x3, w, b)


# ------------------------------ glue (JAX) ---------------------------------

def extract_patches(x, kh, kw, stride, pad):
    # Used only for the stem (3 input channels): x (N,H,W,C) -> (N,Ho,Wo,kh*kw,C)
    N, H, W, C = x.shape
    xp = jnp.pad(x, ((0, 0), (pad, pad), (pad, pad), (0, 0)))
    Ho = (H + 2 * pad - kh) // stride + 1
    Wo = (W + 2 * pad - kw) // stride + 1
    cols = []
    for i in range(kh):
        for j in range(kw):
            cols.append(xp[:, i:i + stride * (Ho - 1) + 1:stride,
                           j:j + stride * (Wo - 1) + 1:stride, :])
    return jnp.stack(cols, axis=3), Ho, Wo


def conv1x1(x, w, b, act):
    # x: (N, H, W, Cp_in) bf16; w: (Cp_in, Cout_p) bf16 (BN folded); b: (1, Cout_p)
    N, H, W, Cp = x.shape
    out = pallas_matmul(x.reshape(N * H * W, Cp), w, b, act)
    return out.reshape(N, H, W, w.shape[1])


# ----------------------------- parameters ----------------------------------

# (expand_ratio, kernel, stride, in_ch, out_ch, num_layers) for EfficientNet-B0
B0_CONFIG = [
    (1, 3, 1, 32, 16, 1),
    (6, 3, 2, 16, 24, 2),
    (6, 5, 2, 24, 40, 2),
    (6, 3, 2, 40, 80, 3),
    (6, 5, 1, 80, 112, 3),
    (6, 5, 2, 112, 192, 4),
    (6, 3, 1, 192, 320, 1),
]


def _fold_bn(w, gamma, beta, mean, var):
    scale = gamma / jnp.sqrt(var + BN_EPS)
    return w * scale, beta - mean * scale


def make_conv_bn(key, kh, kw, cin, cout):
    w = jax.random.normal(key, (kh, kw, cin, cout), jnp.float32)
    w = w * np.sqrt(2.0 / (kh * kw * cin))
    ones = jnp.ones((cout,), jnp.float32)
    zeros = jnp.zeros((cout,), jnp.float32)
    return _fold_bn(w, ones, zeros, zeros, ones)


def make_dwconv_bn(key, k, c):
    w = jax.random.normal(key, (k, k, c), jnp.float32) * np.sqrt(2.0 / (k * k))
    ones = jnp.ones((c,), jnp.float32)
    zeros = jnp.zeros((c,), jnp.float32)
    return _fold_bn(w, ones, zeros, zeros, ones)


def make_linear(key, cin, cout):
    w = jax.random.normal(key, (cin, cout), jnp.float32) * np.sqrt(1.0 / cin)
    return w, jnp.zeros((cout,), jnp.float32)


def _pad_weight(w2d, kp, npad, dtype=jnp.bfloat16):
    K, N = w2d.shape
    return jnp.zeros((kp, npad), dtype).at[:K, :N].set(w2d.astype(dtype))


def _pad_bias(b, npad):
    return jnp.zeros((1, npad), jnp.float32).at[0, :b.shape[0]].set(b)


def init_params(key, num_classes=55):
    """All weights pre-padded (K mult of 8, N/C mult of 128); matmul weights bf16."""
    keys = iter(jax.random.split(key, 256))
    P = {"num_classes": num_classes}

    # stem: 3x3 s2, 3->32; im2col K = 27 padded to 32, Cout padded to 128
    w, b = make_conv_bn(next(keys), 3, 3, 3, 32)
    P["stem_w"] = _pad_weight(w.reshape(27, 32), _round_up(27, 8), 128)
    P["stem_b"] = _pad_bias(b, 128)

    blocks = []
    for (t, k, s, cin, cout, n) in B0_CONFIG:
        for li in range(n):
            ci = cin if li == 0 else cout
            st = s if li == 0 else 1
            exp = ci * t
            cip = _round_up(ci, 128)
            expp = _round_up(exp, 128)
            coutp = _round_up(cout, 128)
            blk = {"k": k, "stride": st, "pad": (k - 1) // 2,
                   "use_res": (st == 1 and ci == cout),
                   "has_expand": (t != 1)}
            if t != 1:
                w, b = make_conv_bn(next(keys), 1, 1, ci, exp)
                blk["expand_w"] = _pad_weight(w.reshape(ci, exp), cip, expp)
                blk["expand_b"] = _pad_bias(b, expp)
            w, b = make_dwconv_bn(next(keys), k, exp)
            blk["dw_w"] = jnp.zeros((k * k, expp), jnp.float32).at[:, :exp].set(
                w.reshape(k * k, exp))
            blk["dw_b"] = _pad_bias(b, expp)
            sq = max(1, ci // 4)
            sqp = _round_up(sq, 128)
            w1, b1 = make_linear(next(keys), exp, sq)
            blk["se1_w"] = _pad_weight(w1, expp, sqp)
            blk["se1_b"] = _pad_bias(b1, sqp)
            w2, b2 = make_linear(next(keys), sq, exp)
            blk["se2_w"] = _pad_weight(w2, sqp, expp)
            blk["se2_b"] = _pad_bias(b2, expp)
            wp, bp = make_conv_bn(next(keys), 1, 1, exp, cout)
            blk["proj_w"] = _pad_weight(wp.reshape(exp, cout), expp, coutp)
            blk["proj_b"] = _pad_bias(bp, coutp)
            blocks.append(blk)
    P["blocks"] = blocks

    # head: 1x1 conv 320 -> 1280 (+BN+SiLU)
    w, b = make_conv_bn(next(keys), 1, 1, 320, 1280)
    P["head_w"] = _pad_weight(w.reshape(320, 1280), _round_up(320, 128), 1280)
    P["head_b"] = _pad_bias(b, 1280)

    # classifier: Linear(1280, num_classes)
    ncp = _round_up(num_classes, 128)
    w, b = make_linear(next(keys), 1280, num_classes)
    P["fc_w"] = _pad_weight(w, 1280, ncp)
    P["fc_b"] = _pad_bias(b, ncp)
    return P


# ------------------------------- forward -----------------------------------

def mbconv_block(x, blk):
    inp = x
    if blk["has_expand"]:
        x = conv1x1(x, blk["expand_w"], blk["expand_b"], "silu")
    x = dwconv(x, blk["dw_w"], blk["dw_b"], blk["stride"], blk["pad"], "silu")
    N, Ho, Wo, Ce = x.shape
    x3 = x.reshape(N, Ho * Wo, Ce)
    # Fused Squeeze-and-Excitation (GAP -> FC+SiLU -> FC+sigmoid), one kernel.
    s = pallas_se(x3, blk["se1_w"], blk["se1_b"], blk["se2_w"], blk["se2_b"])
    s_col = s[:, :, None]                                       # (N, Ce, 1) f32
    res3 = inp.reshape(N, Ho * Wo, inp.shape[-1]) if blk["use_res"] else None
    out3 = pallas_proj_se(x3, s_col, blk["proj_w"], blk["proj_b"], res3)
    return out3.reshape(N, Ho, Wo, out3.shape[-1])


def efficientnet_forward(params, x_nchw):
    x = jnp.transpose(x_nchw, (0, 2, 3, 1)).astype(jnp.float32)  # NCHW -> NHWC
    N = x.shape[0]

    # stem: 3x3 s2 conv + BN + SiLU (tiny 3-channel im2col + matmul, K 27->32)
    patches, Ho, Wo = extract_patches(x, 3, 3, 2, 1)
    a = patches.reshape(N * Ho * Wo, -1).astype(jnp.bfloat16)
    kpad = params["stem_w"].shape[0] - a.shape[1]
    if kpad:
        a = jnp.pad(a, ((0, 0), (0, kpad)))
    x = pallas_matmul(a, params["stem_w"], params["stem_b"], "silu")
    x = x.reshape(N, Ho, Wo, params["stem_w"].shape[1])

    # MBConv stages (bf16 activations, channels padded to multiples of 128)
    for blk in params["blocks"]:
        x = mbconv_block(x, blk)

    # head: 1x1 conv to 1280 + BN + SiLU
    x = conv1x1(x, params["head_w"], params["head_b"], "silu")

    # adaptive avg pool + classifier fused; dropout(0.2) is identity in eval mode
    N, H, W, C = x.shape
    logits = pallas_gap_fc(x.reshape(N, H * W, C), params["fc_w"], params["fc_b"])
    return logits[:, :params["num_classes"]]                     # (N, 55)


if __name__ == "__main__":
    key = jax.random.PRNGKey(0)
    pkey, xkey = jax.random.split(key)
    params = init_params(pkey, num_classes=55)
    # small input consistent with the module: NCHW, 3 channels, 32x32 spatial
    x = jax.random.normal(xkey, (2, 3, 32, 32), jnp.float32)
    logits = efficientnet_forward(params, x)
    logits = jax.block_until_ready(logits)
    assert logits.shape == (2, 55), logits.shape
    assert bool(jnp.all(jnp.isfinite(logits)))
    print("KERNEL_OK")
</pallas_src>

<mosaic_0001>
module attributes {stable_mosaic.version = 11 : i64} {
  func.func @_mm_kernel(%arg0: i32, %arg1: i32, %arg2: memref<512x32xbf16, #tpu.memory_space<vmem>>, %arg3: memref<32x128xbf16, #tpu.memory_space<vmem>>, %arg4: memref<1x128xf32, #tpu.memory_space<vmem>>, %arg5: memref<512x128xbf16, #tpu.memory_space<vmem>>) attributes {dimension_semantics = [#tpu.dimension_semantics<parallel>, #tpu.dimension_semantics<arbitrary>], iteration_bounds = array<i64: 1, 1>, scalar_prefetch = 0 : i64, scratch_operands = 0 : i64, tpu.core_type = #tpu.core_type<tc>, window_params = [{transform_indices = @transform_0, window_bounds = array<i64: 512, 32>}, {transform_indices = @transform_1, window_bounds = array<i64: 32, 128>}, {transform_indices = @transform_2, window_bounds = array<i64: 1, 128>}, {transform_indices = @transform_3, window_bounds = array<i64: 512, 128>}]} {
    %c0 = arith.constant 0 : index
    %c0_0 = arith.constant 0 : index
    %0 = vector.load %arg2[%c0, %c0_0] : memref<512x32xbf16, #tpu.memory_space<vmem>>, vector<512x32xbf16>
    %c0_1 = arith.constant 0 : index
    %c0_2 = arith.constant 0 : index
    %1 = vector.load %arg3[%c0_1, %c0_2] : memref<32x128xbf16, #tpu.memory_space<vmem>>, vector<32x128xbf16>
    %cst = arith.constant dense<0.000000e+00> : vector<512x128xf32>
    %2 = tpu.matmul %0, %1, %cst {dimension_numbers = #tpu.dot_dimension_numbers<[1], [0], [0], [1], [0, 0, 1, 1], [], []>} : vector<512x32xbf16>, vector<32x128xbf16>, vector<512x128xf32> -> vector<512x128xf32>
    %c0_3 = arith.constant 0 : index
    %c0_4 = arith.constant 0 : index
    %3 = vector.load %arg4[%c0_3, %c0_4] : memref<1x128xf32, #tpu.memory_space<vmem>>, vector<1x128xf32>
    %4 = vector.broadcast %3 : vector<1x128xf32> to vector<512x128xf32>
    %5 = arith.addf %2, %4 : vector<512x128xf32>
    %6 = arith.negf %5 : vector<512x128xf32>
    %7 = math.exp %6 : vector<512x128xf32>
    %cst_5 = arith.constant 1.000000e+00 : f32
    %8 = vector.broadcast %cst_5 : f32 to vector<512x128xf32>
    %9 = arith.addf %8, %7 : vector<512x128xf32>
    %10 = arith.divf %8, %9 : vector<512x128xf32>
    %11 = arith.mulf %5, %10 : vector<512x128xf32>
    %12 = arith.truncf %11 : vector<512x128xf32> to vector<512x128xbf16>
    %c0_6 = arith.constant 0 : index
    %c0_7 = arith.constant 0 : index
    %13 = vector.load %arg5[%c0_6, %c0_7] : memref<512x128xbf16, #tpu.memory_space<vmem>>, vector<512x128xbf16>
    tpu.vector_store %arg5[%c0_6, %c0_7], %12 {strides = array<i32>} : memref<512x128xbf16, #tpu.memory_space<vmem>>, vector<512x128xbf16>,
    return
  }
  func.func @transform_0(%arg0: i32, %arg1: i32) -> (i32, i32) {
    %c0_i32 = arith.constant 0 : i32
    %c0_i32_0 = arith.constant 0 : i32
    return %arg0, %c0_i32 : i32, i32
  }
  func.func @transform_1(%arg0: i32, %arg1: i32) -> (i32, i32) {
    %c0_i32 = arith.constant 0 : i32
    %c0_i32_0 = arith.constant 0 : i32
    return %c0_i32, %arg1 : i32, i32
  }
  func.func @transform_2(%arg0: i32, %arg1: i32) -> (i32, i32) {
    %c0_i32 = arith.constant 0 : i32
    %c0_i32_0 = arith.constant 0 : i32
    return %c0_i32, %arg1 : i32, i32
  }
  func.func @transform_3(%arg0: i32, %arg1: i32) -> (i32, i32) {
    %c0_i32 = arith.constant 0 : i32
    return %arg0, %arg1 : i32, i32
  }
}

</mosaic_0001>

<bundles_post_ra>
// kernel: tpu_custom_call.1
= control target key start
LH: loop header
LB: loop body
LE: loop exit
PB: predicated region body
PF: predicated region fallthrough
CT: control target
= control target key end

     0   :  { %vm263_vm0 = vcmask 261120   ;;  %s2934_s0 = inlined_call_operand.vmem [shape: bf16[512,32], index: 0, kind: input, shape index: {}]   ;;  %s2935_s1 = inlined_call_operand.vmem [shape: bf16[32,128], index: 1, kind: input, shape index: {}]   ;;  %s2936_s2 = inlined_call_operand.vmem [shape: f32[1,128], index: 2, kind: input, shape index: {}]   ;;  %s2937_s3 = inlined_call_operand.hbm [shape: bf16[512,128], index: 3, kind: output, shape index: {}]  }
   0x1   :  { %v1992_v0 = vld [vmem:[%s2935_s1] sm:$0xff]   ;;  %v1993_v1 = vld [vmem:[%s2935_s1 + $0x8] sm:$0xff]   ;;  %v1998_v6 = vld [vmem:[%s2934_s0 + $0x10] sm:$0xff]  }
   0x2   :  { %1917 = vmatprep.subr.bf16.mxu0 %v1992_v0  ;;  %1985 = vmatprep.subr.bf16.mxu1 %v1992_v0  ;;  %v1994_v2 = vld [vmem:[%s2934_s0] sm:$0xff]   ;;  %v1996_v4 = vld [vmem:[%s2934_s0 + $0x8] sm:$0xff]   ;;  %v1999_v7 = vld [vmem:[%s2934_s0 + $0x90] sm:$0xff]  }
   0x3   :  { %1918 = vmatpush3.bf16.msra.mxu0 %v1992_v0  ;;  %1987 = vmatpush3.bf16.msra.mxu1 %v1992_v0  ;;  %v1995_v3 = vld [vmem:[%s2934_s0 + $0x80] sm:$0xff]   ;;  %v1997_v5 = vld [vmem:[%s2934_s0 + $0x88] sm:$0xff]   ;;  %v2000_v8 = vld [vmem:[%s2934_s0 + $0x18] sm:$0xff]  }
   0x4   :  { %1919 = vmatprep.subr.bf16.mxu0 %v1993_v1  ;;  %1986 = vmatprep.subr.bf16.mxu1 %v1993_v1  ;;  %v2001_v9 = vld [vmem:[%s2934_s0 + $0x98] sm:$0xff]   ;;  %v2002_v10 = vld [vmem:[%s2934_s0 + $0x20] sm:$0xff]   ;;  %v2004_v12 = vld [vmem:[%s2934_s0 + $0x28] sm:$0xff]  }
   0x5   :  { %1921 = vmatprep.mubr.msk.bf16.mxu0 %vm263_vm0, %v1994_v2  ;;  %1953 = vmatprep.mubr.msk.bf16.mxu1 %vm263_vm0, %v1995_v3  ;;  %v2003_v11 = vld [vmem:[%s2934_s0 + $0xa0] sm:$0xff]   ;;  %v2005_v13 = vld [vmem:[%s2934_s0 + $0xa8] sm:$0xff]   ;;  %v2006_v14 = vld [vmem:[%s2934_s0 + $0x30] sm:$0xff]  }
   0x6   :  { %v2007_v15 = vld [vmem:[%s2934_s0 + $0xb0] sm:$0xff]   ;;  %v2008_v16 = vld [vmem:[%s2934_s0 + $0x38] sm:$0xff]   ;;  %v2010_v18 = vld [vmem:[%s2934_s0 + $0x40] sm:$0xff]  }
   0x7   :  { %1920 = vmatpush3.bf16.msra.mxu0 %v1993_v1  ;;  %1988 = vmatpush3.bf16.msra.mxu1 %v1993_v1  ;;  %v2009_v17 = vld [vmem:[%s2934_s0 + $0xb8] sm:$0xff]   ;;  %v2011_v19 = vld [vmem:[%s2934_s0 + $0xc0] sm:$0xff]  }
   0xa   :  { %1922 = vmatmul.mubr.msk.bf16.vlgmr.msra.gmra.mrb[0].mxu0 %vm263_vm0, %v1996_v4  ;;  %1954 = vmatmul.mubr.msk.bf16.vlgmr.msra.gmra.mrb[0].mxu1 %vm263_vm0, %v1997_v5 }
   0xb   :  { %1925 = vmatprep.mubr.msk.bf16.mxu0 %vm263_vm0, %v1998_v6  ;;  %1957 = vmatprep.mubr.msk.bf16.mxu1 %vm263_vm0, %v1999_v7 }
  0x12   :  { %1926 = vmatmul.mubr.msk.bf16.gmra.mrb[4].mxu0 %vm263_vm0, %v2000_v8  ;;  %1958 = vmatmul.mubr.msk.bf16.gmra.mrb[4].mxu1 %vm263_vm0, %v2001_v9 }
  0x13   :  { %1929 = vmatprep.mubr.msk.bf16.mxu0 %vm263_vm0, %v2002_v10  ;;  %1961 = vmatprep.mubr.msk.bf16.mxu1 %vm263_vm0, %v2003_v11 }
  0x1a   :  { %1930 = vmatmul.mubr.msk.bf16.gmra.mrb[8].mxu0 %vm263_vm0, %v2004_v12  ;;  %1962 = vmatmul.mubr.msk.bf16.gmra.mrb[8].mxu1 %vm263_vm0, %v2005_v13 }
  0x1b   :  { %1933 = vmatprep.mubr.msk.bf16.mxu0 %vm263_vm0, %v2006_v14  ;;  %1965 = vmatprep.mubr.msk.bf16.mxu1 %vm263_vm0, %v2007_v15 }
  0x22   :  { %1934 = vmatmul.mubr.msk.bf16.gmra.mrb[12].mxu0 %vm263_vm0, %v2008_v16  ;;  %1966 = vmatmul.mubr.msk.bf16.gmra.mrb[12].mxu1 %vm263_vm0, %v2009_v17 }
  0x23   :  { %8 = vsyncpa [#allocation3], 0  ;;  %1937 = vmatprep.mubr.msk.bf16.mxu0 %vm263_vm0, %v2010_v18  ;;  %1969 = vmatprep.mubr.msk.bf16.mxu1 %vm263_vm0, %v2011_v19  ;;  %v2012_v20 = vld [vmem:[%s2934_s0 + $0x48] sm:$0xff]   ;;  %v2014_v22 = vld [vmem:[%s2934_s0 + $0x50] sm:$0xff]  }
  0x24   :  { %v2013_v21 = vld [vmem:[%s2934_s0 + $0xc8] sm:$0xff]   ;;  %v2015_v23 = vld [vmem:[%s2934_s0 + $0xd0] sm:$0xff]   ;;  %v2016_v24 = vld [vmem:[%s2934_s0 + $0x58] sm:$0xff]  }
  0x25   :  { %v2017_v25 = vld [vmem:[%s2934_s0 + $0xd8] sm:$0xff]   ;;  %v2018_v26 = vld [vmem:[%s2934_s0 + $0x60] sm:$0xff]   ;;  %v2020_v28 = vld [vmem:[%s2934_s0 + $0x68] sm:$0xff]  }
  0x26   :  { %v2019_v27 = vld [vmem:[%s2934_s0 + $0xe0] sm:$0xff]   ;;  %v2021_v29 = vld [vmem:[%s2934_s0 + $0xe8] sm:$0xff]   ;;  %v2022_v30 = vld [vmem:[%s2934_s0 + $0x70] sm:$0xff]  }
  0x27   :  { %v2023_v31 = vld [vmem:[%s2934_s0 + $0xf0] sm:$0xff]   ;;  %v2024_v32 = vld [vmem:[%s2934_s0 + $0x78] sm:$0xff]   ;;  %v2467_v34 = vld [vmem:[%s2936_s2] ss:$0 sm:$0xff] }
  0x28   :  { %v2025_v33 = vld [vmem:[%s2934_s0 + $0xf8] sm:$0xff]  }
  0x2a   :  { %1938 = vmatmul.mubr.msk.bf16.gmra.mrb[16].mxu0 %vm263_vm0, %v2012_v20  ;;  %1970 = vmatmul.mubr.msk.bf16.gmra.mrb[16].mxu1 %vm263_vm0, %v2013_v21 }
  0x2b   :  { %1941 = vmatprep.mubr.msk.bf16.mxu0 %vm263_vm0, %v2014_v22  ;;  %1973 = vmatprep.mubr.msk.bf16.mxu1 %vm263_vm0, %v2015_v23 }
  0x32   :  { %1942 = vmatmul.mubr.msk.bf16.gmra.mrb[20].mxu0 %vm263_vm0, %v2016_v24  ;;  %1974 = vmatmul.mubr.msk.bf16.gmra.mrb[20].mxu1 %vm263_vm0, %v2017_v25 }
  0x33   :  { %1945 = vmatprep.mubr.msk.bf16.mxu0 %vm263_vm0, %v2018_v26  ;;  %1977 = vmatprep.mubr.msk.bf16.mxu1 %vm263_vm0, %v2019_v27 }
  0x3a   :  { %1946 = vmatmul.mubr.msk.bf16.gmra.mrb[24].mxu0 %vm263_vm0, %v2020_v28  ;;  %1978 = vmatmul.mubr.msk.bf16.gmra.mrb[24].mxu1 %vm263_vm0, %v2021_v29 }
  0x3b   :  { %1949 = vmatprep.mubr.msk.bf16.mxu0 %vm263_vm0, %v2022_v30  ;;  %1981 = vmatprep.mubr.msk.bf16.mxu1 %vm263_vm0, %v2023_v31 }
  0x42   :  { %1950 = vmatmul.mubr.msk.bf16.gmra.mrb[28].mxu0 %vm263_vm0, %v2024_v32  ;;  %1982 = vmatmul.mubr.msk.bf16.gmra.mrb[28].mxu1 %vm263_vm0, %v2025_v33 }
  0xdd   :  { %v1923_v35 = vpop.f32.mrb[0].mxu0  ;;  %v1955_v36 = vpop.f32.mrb[0].mxu1 }
  0xde   :  { %v2470_v37 = vadd.f32 %v1923_v35, %v2467_v34  ;;  %v2473_v38 = vadd.f32 %v1955_v36, %v2467_v34  ;;  %v394_v39 = vpop.f32.mrb[1].mxu0  ;;  %v522_v40 = vpop.f32.mrb[1].mxu1 }
  0xdf   :  { %v2476_v41 = vadd.f32 %v2467_v34, %v394_v39  ;;  %v2479_v42 = vadd.f32 %v2467_v34, %v522_v40  ;;  %v1924_v43 = vpop.f32.mrb[2].mxu0  ;;  %v1956_v44 = vpop.f32.mrb[2].mxu1 }
  0xe0   :  { %v1502_v45 = vmul.f32 -1.442695, %v2470_v37  ;;  %v1534_v46 = vmul.f32 -1.442695, %v2473_v38  ;;  %v2484_v47 = vadd.f32 %v1924_v43, %v2467_v34  ;;  %v2487_v48 = vadd.f32 %v1956_v44, %v2467_v34  ;;  %v397_v49 = vpop.f32.mrb[3].mxu0  ;;  %v525_v50 = vpop.f32.mrb[3].mxu1 }
  0xe1   :  { %v1500_v51 = vmul.f32 -1.442695, %v2476_v41  ;;  %v1532_v52 = vmul.f32 -1.442695, %v2479_v42  ;;  %v2492_v53 = vadd.f32 %v2467_v34, %v397_v49  ;;  %v2495_v54 = vadd.f32 %v2467_v34, %v525_v50 }
  0xe2   :  { %2026 = vpow2.f32 %v1502_v45  ;;  %v1503_v55 = vmul.f32 -1.442695, %v2484_v47  ;;  %v1535_v56 = vmul.f32 -1.442695, %v2487_v48 }
  0xe3   :  { %2028 = vpow2.f32 %v1534_v46  ;;  %v1501_v57 = vmul.f32 -1.442695, %v2492_v53  ;;  %v1533_v58 = vmul.f32 -1.442695, %v2495_v54 }
  0xe4   :  { %2030 = vpow2.f32 %v1500_v51 }
  0xe5   :  { %2032 = vpow2.f32 %v1532_v52  ;;  %v1927_v59 = vpop.f32.mrb[4].mxu0  ;;  %v1959_v60 = vpop.f32.mrb[4].mxu1 }
  0xe6   :  { %2034 = vpow2.f32 %v1503_v55  ;;  %v2502_v61 = vadd.f32 %v1927_v59, %v2467_v34  ;;  %v2505_v62 = vadd.f32 %v1959_v60, %v2467_v34  ;;  %v410_v63 = vpop.f32.mrb[5].mxu0  ;;  %v538_v0 = vpop.f32.mrb[5].mxu1 }
  0xe7   :  { %2036 = vpow2.f32 %v1535_v56  ;;  %v2508_v1 = vadd.f32 %v2467_v34, %v410_v63  ;;  %v2511_v2 = vadd.f32 %v2467_v34, %v538_v0  ;;  %v1928_v3 = vpop.f32.mrb[6].mxu0  ;;  %v1960_v4 = vpop.f32.mrb[6].mxu1 }
  0xe8   :  { %2038 = vpow2.f32 %v1501_v57  ;;  %v1506_v5 = vmul.f32 -1.442695, %v2502_v61  ;;  %v1538_v6 = vmul.f32 -1.442695, %v2505_v62  ;;  %v2516_v7 = vadd.f32 %v1928_v3, %v2467_v34  ;;  %v413_v8 = vpop.f32.mrb[7].mxu0  ;;  %v541_v9 = vpop.f32.mrb[7].mxu1 }
  0xe9   :  { %2040 = vpow2.f32 %v1533_v58  ;;  %v1504_v10 = vmul.f32 -1.442695, %v2508_v1  ;;  %v1536_v11 = vmul.f32 -1.442695, %v2511_v2  ;;  %v2522_v31 = vadd.f32 %v1960_v4, %v2467_v34 }
  0xea   :  { %2042 = vpow2.f32 %v1506_v5  ;;  %v1507_v12 = vmul.f32 -1.442695, %v2516_v7  ;;  %v2525_v36 = vadd.f32 %v2467_v34, %v413_v8  ;;  %v2529_v50 = vadd.f32 %v2467_v34, %v541_v9 }
  0xeb   :  { %2044 = vpow2.f32 %v1538_v6  ;;  %v1539_v49 = vmul.f32 -1.442695, %v2522_v31 }
  0xec   :  { %v2027_v13 = vpop.eup %2026  ;;  %2046 = vpow2.f32 %v1504_v10  ;;  %v1505_v56 = vmul.f32 -1.442695, %v2525_v36 }
  0xed   :  { %v2029_v14 = vpop.eup %2028  ;;  %v843_v15 = vadd.f32 1.0, %v2027_v13  ;;  %2048 = vpow2.f32 %v1536_v11  ;;  %v1931_v16 = vpop.f32.mrb[8].mxu0 }
  0xee   :  { %v1963_v17 = vpop.f32.mrb[8].mxu1  ;;  %v2031_v18 = vpop.eup %2030  ;;  %v875_v19 = vadd.f32 1.0, %v2029_v14  ;;  %2050 = vpow2.f32 %v1507_v12  ;;  %v2533_v57 = vadd.f32 %v1931_v16, %v2467_v34 }
  0xef   :  { %v426_v20 = vpop.f32.mrb[9].mxu0  ;;  %v554_v21 = vpop.f32.mrb[9].mxu1  ;;  %2052 = vrcp.f32 %v843_v15  ;;  %v841_v23 = vadd.f32 1.0, %v2031_v18  ;;  %v2538_v0 = vadd.f32 %v1963_v17, %v2467_v34 }
  0xf0   :  { %v2033_v22 = vpop.eup %2032  ;;  %v1932_v24 = vpop.f32.mrb[10].mxu0  ;;  %2054 = vrcp.f32 %v875_v19  ;;  %v2541_v3 = vadd.f32 %v2467_v34, %v426_v20  ;;  %v2548_v9 = vadd.f32 %v2467_v34, %v554_v21  ;;  %v1537_v19 = vmul.f32 -1.442695, %v2529_v50 }
  0xf1   :  { %v1964_v25 = vpop.f32.mrb[10].mxu1  ;;  %v2035_v26 = vpop.eup %2034  ;;  %v873_v27 = vadd.f32 1.0, %v2033_v22  ;;  %2056 = vrcp.f32 %v841_v23  ;;  %v2551_v10 = vadd.f32 %v1932_v24, %v2467_v34  ;;  %v1510_v21 = vmul.f32 -1.442695, %v2533_v57 }
  0xf2   :  { %v429_v28 = vpop.f32.mrb[11].mxu0  ;;  %v2037_v29 = vpop.eup %2036  ;;  %v844_v30 = vadd.f32 1.0, %v2035_v26  ;;  %v2558_v15 = vadd.f32 %v1964_v25, %v2467_v34  ;;  %v1542_v22 = vmul.f32 -1.442695, %v2538_v0  ;;  %v1508_v24 = vmul.f32 -1.442695, %v2541_v3 }
  0xf3   :  { %v557_v32 = vpop.f32.mrb[11].mxu1  ;;  %v2039_v33 = vpop.eup %2038  ;;  %2058 = vrcp.f32 %v873_v27  ;;  %v876_v35 = vadd.f32 1.0, %v2037_v29  ;;  %v2561_v16 = vadd.f32 %v2467_v34, %v429_v28  ;;  %v1540_v25 = vmul.f32 -1.442695, %v2548_v9 }
  0xf4   :  { %v2041_v39 = vpop.eup %2040  ;;  %2060 = vrcp.f32 %v844_v30  ;;  %v842_v40 = vadd.f32 1.0, %v2039_v33  ;;  %v1511_v26 = vmul.f32 -1.442695, %v2551_v10  ;;  %v1543_v28 = vmul.f32 -1.442695, %v2558_v15 }
  0xf5   :  { %v2043_v43 = vpop.eup %2042  ;;  %2062 = vrcp.f32 %v876_v35  ;;  %v874_v44 = vadd.f32 1.0, %v2041_v39  ;;  %v1935_v51 = vpop.f32.mrb[12].mxu0  ;;  %v1509_v29 = vmul.f32 -1.442695, %v2561_v16  ;;  %v2574_v30 = vadd.f32 %v2467_v34, %v557_v32 }
  0xf6   :  { %v2045_v45 = vpop.eup %2044  ;;  %2064 = vrcp.f32 %v842_v40  ;;  %v847_v46 = vadd.f32 1.0, %v2043_v43  ;;  %v1967_v58 = vpop.f32.mrb[12].mxu1 }
  0xf7   :  { %v2047_v52 = vpop.eup %2046  ;;  %2066 = vrcp.f32 %v874_v44  ;;  %v879_v55 = vadd.f32 1.0, %v2045_v45  ;;  %v2535_v59 = vpop.f32.mrb[13].mxu0  ;;  %v2583_v44 = vadd.f32 %v1935_v51, %v2467_v34 }
  0xf8   :  { %v2049_v60 = vpop.eup %2048  ;;  %2068 = vrcp.f32 %v847_v46  ;;  %v845_v63 = vadd.f32 1.0, %v2047_v52  ;;  %v2543_v4 = vpop.f32.mrb[13].mxu1 }
  0xf9   :  { %v2545_v5 = vpop.f32.mrb[14].mxu0  ;;  %v2051_v6 = vpop.eup %2050  ;;  %2070 = vrcp.f32 %v879_v55  ;;  %v877_v8 = vadd.f32 1.0, %v2049_v60  ;;  %v2592_v55 = vadd.f32 %v1967_v58, %v2467_v34 }
  0xfa   :  { %v2553_v11 = vpop.f32.mrb[14].mxu1  ;;  %v2555_v12 = vpop.f32.mrb[15].mxu0  ;;  %2072 = vrcp.f32 %v845_v63  ;;  %v848_v14 = vadd.f32 1.0, %v2051_v6 }
  0xfb   :  { %v2053_v13 = vpop.eup %2052  ;;  %v2563_v17 = vpop.f32.mrb[15].mxu1  ;;  %2074 = vrcp.f32 %v877_v8 }
  0xfc   :  { %v2055_v18 = vpop.eup %2054  ;;  %2076 = vrcp.f32 %v848_v14  ;;  %v1035_v40 = vmul.f32 %v2053_v13, %v2470_v37 }
  0xfd   :  { %v2057_v20 = vpop.eup %2056  ;;  %2078 = vpow2.f32 %v1539_v49  ;;  %v2576_v33 = vpop.f32.mrb[16].mxu0  ;;  %v1067_v32 = vmul.f32 %v2055_v18, %v2473_v38 }
  0xfe   :  { %v2059_v23 = vpop.eup %2058  ;;  %2080 = vpow2.f32 %v1505_v56  ;;  %v2578_v35 = vpop.f32.mrb[16].mxu1  ;;  %v1033_v51 = vmul.f32 %v2057_v20, %v2476_v41  ;;  %v1541_v41 = vmul.f32 -1.442695, %v2574_v30  ;;  %v1514_v20 = vmul.f32 -1.442695, %v2583_v44 }
  0xff   :  { %v2061_v27 = vpop.eup %2060  ;;  %2082 = vpow2.f32 %v1537_v19  ;;  %v2585_v45 = vpop.f32.mrb[17].mxu0  ;;  %v1065_v8 = vmul.f32 %v2059_v23, %v2479_v42  ;;  %v1546_v42 = vmul.f32 -1.442695, %v2592_v55 }
 0x100   :  { %v2063_v39 = vpop.eup %2062  ;;  %v1036_v43 = vmul.f32 %v2061_v27, %v2484_v47  ;;  %v2587_v46 = vpop.f32.mrb[17].mxu1  ;;  %2084 = vpow2.f32 %v1510_v21 }
 0x101   :  { %v2065_v49 = vpop.eup %2064  ;;  %v1068_v52 = vmul.f32 %v2063_v39, %v2487_v48  ;;  %v2594_v37 = vpop.f32.mrb[18].mxu0  ;;  %2086 = vpow2.f32 %v1542_v22 }
 0x102   :  { %v2596_v47 = vpop.f32.mrb[18].mxu1  ;;  %v2067_v56 = vpop.eup %2066  ;;  %v1700_v60 = vpack.c.bf16 %v1036_v43, %v1035_v40  ;;  %v1034_v63 = vmul.f32 %v2065_v49, %v2492_v53  ;;  %2088 = vpow2.f32 %v1508_v24 }
 0x103   :  { %v2600_v6 = vpop.f32.mrb[19].mxu0  ;;  %v2602_v38 = vpop.f32.mrb[19].mxu1  ;;  %v1780_v58 = vpack.c.bf16 %v1068_v52, %v1067_v32  ;;  %v1066_v13 = vmul.f32 %v2067_v56, %v2495_v54  ;;  %2090 = vpow2.f32 %v1540_v25 }
 0x104   :  { %v2069_v48 = vpop.eup %2068  ;;  %1852 = vst [vmem:[#allocation2 + $0x8] sm:$0xff] %v1700_v60   ;;  %v1695_v18 = vpack.c.bf16 %v1034_v63, %v1033_v51  ;;  %2092 = vpow2.f32 %v1511_v26 }
 0x105   :  { %v2606_v14 = vpop.eup %2070  ;;  %1868 = vst [vmem:[#allocation2 + $0x88] sm:$0xff] %v1780_v58   ;;  %v1775_v19 = vpack.c.bf16 %v1066_v13, %v1065_v8  ;;  %2094 = vpow2.f32 %v1543_v28  ;;  %v2615_v22 = vpop.f32.mrb[20].mxu0  ;;  %v1039_v25 = vmul.f32 %v2069_v48, %v2502_v61  ;;  %v2635_v48 = vadd.f32 %v2467_v34, %v2535_v59 }
 0x106   :  { %v2609_v53 = vpop.eup %2072  ;;  %1696 = vst [vmem:[#allocation2] sm:$0xff] %v1695_v18   ;;  %2096 = vpow2.f32 %v1509_v29  ;;  %v2617_v23 = vpop.f32.mrb[20].mxu1  ;;  %v2639_v13 = vadd.f32 %v2467_v34, %v2543_v4  ;;  %v2647_v59 = vadd.f32 %v2553_v11, %v2467_v34 }
 0x107   :  { %v2612_v21 = vpop.eup %2074  ;;  %1867 = vst [vmem:[#allocation2 + $0x80] sm:$0xff] %v1775_v19   ;;  %2098 = vpow2.f32 %v1541_v41  ;;  %v2621_v27 = vpop.f32.mrb[21].mxu0  ;;  %v2643_v19 = vadd.f32 %v2545_v5, %v2467_v34  ;;  %v2656_v5 = vadd.f32 %v2467_v34, %v2555_v12 }
 0x108   :  { %v2077_v54 = vpop.eup %2076  ;;  %v2623_v39 = vpop.f32.mrb[21].mxu1  ;;  %2100 = vpow2.f32 %v1514_v20 }
 0x109   :  { %v2079_v24 = vpop.eup %2078  ;;  %v1040_v26 = vmul.f32 %v2077_v54, %v2516_v7  ;;  %v2625_v43 = vpop.f32.mrb[22].mxu0  ;;  %2102 = vpow2.f32 %v1546_v42 }
 0x10a   :  { %v2081_v28 = vpop.eup %2080  ;;  %v880_v40 = vadd.f32 1.0, %v2079_v24  ;;  %v2627_v29 = vpop.f32.mrb[22].mxu1 }
 0x10b   :  { %v2083_v49 = vpop.eup %2082  ;;  %v1710_v32 = vpack.c.bf16 %v1040_v26, %v1039_v25  ;;  %v846_v52 = vadd.f32 1.0, %v2081_v28  ;;  %v2629_v56 = vpop.f32.mrb[23].mxu0  ;;  %v1512_v26 = vmul.f32 -1.442695, %v2635_v48 }
 0x10c   :  { %v2631_v61 = vpop.f32.mrb[23].mxu1  ;;  %v2085_v7 = vpop.eup %2084  ;;  %2104 = vrcp.f32 %v880_v40  ;;  %v878_v51 = vadd.f32 1.0, %v2083_v49 }
 0x10d   :  { %v2087_v60 = vpop.eup %2086  ;;  %1854 = vst [vmem:[#allocation2 + $0x18] sm:$0xff] %v1710_v32   ;;  %2106 = vrcp.f32 %v846_v52  ;;  %v851_v63 = vadd.f32 1.0, %v2085_v7  ;;  %v2649_v54 = vpop.f32.mrb[24].mxu0  ;;  %v1544_v32 = vmul.f32 -1.442695, %v2639_v13 }
 0x10e   :  { %v2089_v8 = vpop.eup %2088  ;;  %2108 = vrcp.f32 %v878_v51  ;;  %v883_v58 = vadd.f32 1.0, %v2087_v60  ;;  %v2651_v24 = vpop.f32.mrb[24].mxu1 }
 0x10f   :  { %v2091_v18 = vpop.eup %2090  ;;  %2110 = vrcp.f32 %v851_v63  ;;  %v849_v41 = vadd.f32 1.0, %v2089_v8  ;;  %v2658_v28 = vpop.f32.mrb[25].mxu0  ;;  %v1515_v63 = vmul.f32 -1.442695, %v2643_v19 }
 0x110   :  { %v2093_v20 = vpop.eup %2092  ;;  %2112 = vrcp.f32 %v883_v58  ;;  %v881_v42 = vadd.f32 1.0, %v2091_v18  ;;  %v2660_v40 = vpop.f32.mrb[25].mxu1 }
 0x111   :  { %v2095_v4 = vpop.eup %2094  ;;  %2114 = vrcp.f32 %v849_v41  ;;  %v852_v25 = vadd.f32 1.0, %v2093_v20  ;;  %v2663_v52 = vpop.f32.mrb[26].mxu0  ;;  %v1547_v41 = vmul.f32 -1.442695, %v2647_v59  ;;  %v2675_v20 = vadd.f32 %v2467_v34, %v2563_v17 }
 0x112   :  { %v2097_v49 = vpop.eup %2096  ;;  %2116 = vrcp.f32 %v881_v42  ;;  %v884_v11 = vadd.f32 1.0, %v2095_v4  ;;  %v2665_v7 = vpop.f32.mrb[26].mxu1  ;;  %v2688_v17 = vadd.f32 %v2467_v34, %v2585_v45  ;;  %v2702_v45 = vadd.f32 %v2594_v37, %v2467_v34 }
 0x113   :  { %2939 = vst [vmem:[#allocation5_spill] sm:$0xff] %v2665_v7  ;;  %v2099_v51 = vpop.eup %2098  ;;  %2118 = vrcp.f32 %v852_v25  ;;  %v850_v60 = vadd.f32 1.0, %v2097_v49  ;;  %v2668_v12 = vpop.f32.mrb[27].mxu0  ;;  %v1513_v25 = vmul.f32 -1.442695, %v2656_v5  ;;  %v2680_v49 = vadd.f32 %v2576_v33, %v2467_v34 }
 0x114   :  { %2940 = vst [vmem:[#allocation6_spill] sm:$0xff] %v2668_v12  ;;  %v2670_v8 = vpop.f32.mrb[27].mxu1  ;;  %v2101_v58 = vpop.eup %2100  ;;  %2120 = vrcp.f32 %v884_v11  ;;  %v882_v18 = vadd.f32 1.0, %v2099_v51  ;;  %v2684_v11 = vadd.f32 %v2578_v35, %v2467_v34  ;;  %v2695_v33 = vadd.f32 %v2467_v34, %v2587_v46 }
 0x115   :  { %2941 = vst [vmem:[#allocation7_spill] sm:$0xff] %v2670_v8  ;;  %v2103_v42 = vpop.eup %2102  ;;  %2122 = vrcp.f32 %v850_v60  ;;  %v855_v4 = vadd.f32 1.0, %v2101_v58  ;;  %v1071_v60 = vmul.f32 %v2606_v14, %v2505_v62  ;;  %v1037_v35 = vmul.f32 %v2609_v53, %v2508_v1  ;;  %v2704_v7 = vpop.f32.mrb[28].mxu0 }
 0x116   :  { %v2105_v12 = vpop.eup %2104  ;;  %2124 = vrcp.f32 %v882_v18  ;;  %v887_v8 = vadd.f32 1.0, %v2103_v42  ;;  %2942 = vst [vmem:[#allocation8_spill] sm:$0xff] %v2695_v33  ;;  %v2706_v62 = vpop.f32.mrb[28].mxu1  ;;  %v1069_v46 = vmul.f32 %v2612_v21, %v2511_v2  ;;  %v1545_v37 = vmul.f32 -1.442695, %v2675_v20 }
 0x117   :  { %v2107_v51 = vpop.eup %2106  ;;  %v1072_v58 = vmul.f32 %v2105_v12, %v2522_v31  ;;  %2126 = vrcp.f32 %v855_v4  ;;  %v2711_v1 = vpop.f32.mrb[29].mxu0  ;;  %v2718_v4 = vadd.f32 %v2596_v47, %v2467_v34 }
 0x118   :  { %v2109_v18 = vpop.eup %2108  ;;  %v1038_v42 = vmul.f32 %v2107_v51, %v2525_v36  ;;  %2128 = vrcp.f32 %v887_v8  ;;  %v2713_v36 = vpop.f32.mrb[29].mxu1 }
 0x119   :  { %v2111_v31 = vpop.eup %2110  ;;  %v1790_v14 = vpack.c.bf16 %v1072_v58, %v1071_v60  ;;  %v1070_v12 = vmul.f32 %v2109_v18, %v2529_v50  ;;  %2130 = vpow2.f32 %v1512_v26  ;;  %v2720_v51 = vpop.f32.mrb[30].mxu0  ;;  %v1518_v26 = vmul.f32 -1.442695, %v2680_v49 }
 0x11a   :  { %v2113_v53 = vpop.eup %2112  ;;  %v1705_v8 = vpack.c.bf16 %v1038_v42, %v1037_v35  ;;  %2132 = vpow2.f32 %v1544_v32  ;;  %2943 = vst [vmem:[#allocation9_spill] sm:$0xff] %v2720_v51  ;;  %v2722_v2 = vpop.f32.mrb[30].mxu1  ;;  %v2727_v60 = vadd.f32 %v2467_v34, %v2600_v6  ;;  %v1550_v18 = vmul.f32 -1.442695, %v2684_v11 }
 0x11b   :  { %2944 = vst [vmem:[#allocation10_spill] sm:$0xff] %v2722_v2  ;;  %v2115_v21 = vpop.eup %2114  ;;  %1870 = vst [vmem:[#allocation2 + $0x98] sm:$0xff] %v1790_v14   ;;  %v1785_v50 = vpack.c.bf16 %v1070_v12, %v1069_v46  ;;  %2134 = vpow2.f32 %v1515_v63  ;;  %v2729_v32 = vpop.f32.mrb[31].mxu0  ;;  %v1516_v63 = vmul.f32 -1.442695, %v2688_v17  ;;  %v1043_v14 = vmul.f32 %v2111_v31, %v2533_v57 }
 0x11c   :  { %2945 = vst [vmem:[#allocation11_spill] sm:$0xff] %v2729_v32  ;;  %v2731_v58 = vpop.f32.mrb[31].mxu1  ;;  %v2117_v47 = vpop.eup %2116  ;;  %1853 = vst [vmem:[#allocation2 + $0x10] sm:$0xff] %v1705_v8   ;;  %2136 = vpow2.f32 %v1547_v41  ;;  %v1548_v42 = vmul.f32 -1.442695, %v2695_v33  ;;  %v1041_v2 = vmul.f32 %v2115_v21, %v2541_v3 }
 0x11d   :  { %2946 = vst [vmem:[#allocation12_spill] sm:$0xff] %v2731_v58  ;;  %v2119_v35 = vpop.eup %2118  ;;  %1869 = vst [vmem:[#allocation2 + $0x90] sm:$0xff] %v1785_v50   ;;  %2138 = vpow2.f32 %v1513_v25  ;;  %v1519_v46 = vmul.f32 -1.442695, %v2702_v45  ;;  %v1551_v8 = vmul.f32 -1.442695, %v2718_v4  ;;  %v1075_v58 = vmul.f32 %v2113_v53, %v2538_v0 }
 0x11e   :  { %v2121_v6 = vpop.eup %2120  ;;  %v1044_v12 = vmul.f32 %v2119_v35, %v2551_v10  ;;  %2140 = vpow2.f32 %v1545_v37  ;;  %v1517_v25 = vmul.f32 -1.442695, %v2727_v60  ;;  %v1073_v10 = vmul.f32 %v2117_v47, %v2548_v9 }
 0x11f   :  { %v2123_v41 = vpop.eup %2122  ;;  %v1076_v50 = vmul.f32 %v2121_v6, %v2558_v15  ;;  %2142 = vpow2.f32 %v1518_v26 }
 0x120   :  { %v2125_v32 = vpop.eup %2124  ;;  %v1720_v51 = vpack.c.bf16 %v1044_v12, %v1043_v14  ;;  %v1042_v33 = vmul.f32 %v2123_v41, %v2561_v16  ;;  %2144 = vpow2.f32 %v1550_v18  ;;  %v2757_v14 = vadd.f32 %v2615_v22, %v2467_v34 }
 0x121   :  { %v2745_v57 = vpop.eup %2126  ;;  %v1800_v31 = vpack.c.bf16 %v1076_v50, %v1075_v58  ;;  %v1074_v37 = vmul.f32 %v2125_v32, %v2574_v30  ;;  %2146 = vpow2.f32 %v1516_v63  ;;  %v2761_v12 = vadd.f32 %v2617_v23, %v2467_v34 }
 0x122   :  { %v2749_v0 = vpop.eup %2128  ;;  %1856 = vst [vmem:[#allocation2 + $0x28] sm:$0xff] %v1720_v51   ;;  %v1715_v15 = vpack.c.bf16 %v1042_v33, %v1041_v2  ;;  %2148 = vpow2.f32 %v1548_v42  ;;  %v2753_v42 = vadd.f32 %v2467_v34, %v2602_v38  ;;  %v2765_v50 = vadd.f32 %v2467_v34, %v2621_v27 }
 0x123   :  { %v2131_v53 = vpop.eup %2130  ;;  %1872 = vst [vmem:[#allocation2 + $0xa8] sm:$0xff] %v1800_v31   ;;  %v1795_v3 = vpack.c.bf16 %v1074_v37, %v1073_v10  ;;  %2150 = vpow2.f32 %v1519_v46  ;;  %v2769_v38 = vadd.f32 %v2467_v34, %v2623_v39  ;;  %v2773_v22 = vadd.f32 %v2625_v43, %v2467_v34 }
 0x124   :  { %v2133_v21 = vpop.eup %2132  ;;  %1855 = vst [vmem:[#allocation2 + $0x20] sm:$0xff] %v1715_v15   ;;  %v853_v16 = vadd.f32 1.0, %v2131_v53  ;;  %2152 = vpow2.f32 %v1551_v8  ;;  %v2777_v23 = vadd.f32 %v2627_v29, %v2467_v34  ;;  %v2781_v27 = vadd.f32 %v2467_v34, %v2629_v56 }
 0x125   :  { %v2135_v26 = vpop.eup %2134  ;;  %1871 = vst [vmem:[#allocation2 + $0xa0] sm:$0xff] %v1795_v3   ;;  %v885_v9 = vadd.f32 1.0, %v2133_v21  ;;  %2154 = vpow2.f32 %v1517_v25  ;;  %v1549_v53 = vmul.f32 -1.442695, %v2753_v42  ;;  %v1522_v3 = vmul.f32 -1.442695, %v2757_v14 }
 0x126   :  { %v2137_v58 = vpop.eup %2136  ;;  %2156 = vrcp.f32 %v853_v16  ;;  %v856_v30 = vadd.f32 1.0, %v2135_v26  ;;  %v1554_v29 = vmul.f32 -1.442695, %v2761_v12  ;;  %v1520_v16 = vmul.f32 -1.442695, %v2765_v50 }
 0x127   :  { %v2139_v32 = vpop.eup %2138  ;;  %2158 = vrcp.f32 %v885_v9  ;;  %v888_v51 = vadd.f32 1.0, %v2137_v58  ;;  %v1552_v9 = vmul.f32 -1.442695, %v2769_v38  ;;  %v1523_v56 = vmul.f32 -1.442695, %v2773_v22 }
 0x128   :  { %v2141_v33 = vpop.eup %2140  ;;  %2160 = vrcp.f32 %v856_v30  ;;  %v854_v2 = vadd.f32 1.0, %v2139_v32  ;;  %v1555_v58 = vmul.f32 -1.442695, %v2777_v23  ;;  %v1521_v32 = vmul.f32 -1.442695, %v2781_v27 }
 0x129   :  { %v2143_v47 = vpop.eup %2142  ;;  %2162 = vrcp.f32 %v888_v51  ;;  %v886_v18 = vadd.f32 1.0, %v2141_v33  ;;  %v2793_v51 = vadd.f32 %v2467_v34, %v2631_v61  ;;  %v2797_v33 = vadd.f32 %v2649_v54, %v2467_v34 }
 0x12a   :  { %v2145_v35 = vpop.eup %2144  ;;  %2164 = vrcp.f32 %v854_v2  ;;  %v859_v63 = vadd.f32 1.0, %v2143_v47  ;;  %v1047_v47 = vmul.f32 %v2745_v57, %v2583_v44  ;;  %v1079_v61 = vmul.f32 %v2749_v0, %v2592_v55 }
 0x12b   :  { %v2147_v46 = vpop.eup %2146  ;;  %2166 = vrcp.f32 %v886_v18  ;;  %v891_v6 = vadd.f32 1.0, %v2145_v35  ;;  %v2804_v35 = vadd.f32 %v2651_v24, %v2467_v34  ;;  %v2811_v54 = vadd.f32 %v2467_v34, %v2658_v28 }
 0x12c   :  { %v2149_v8 = vpop.eup %2148  ;;  %2168 = vrcp.f32 %v859_v63  ;;  %v857_v41 = vadd.f32 1.0, %v2147_v46  ;;  %v1553_v28 = vmul.f32 -1.442695, %v2793_v51 }
 0x12d   :  { %v2151_v25 = vpop.eup %2150  ;;  %2170 = vrcp.f32 %v891_v6  ;;  %v889_v10 = vadd.f32 1.0, %v2149_v8 }
 0x12e   :  { %v2153_v31 = vpop.eup %2152  ;;  %2172 = vrcp.f32 %v857_v41  ;;  %v860_v37 = vadd.f32 1.0, %v2151_v25 }
 0x12f   :  { %v2155_v39 = vpop.eup %2154  ;;  %2174 = vrcp.f32 %v889_v10  ;;  %v892_v15 = vadd.f32 1.0, %v2153_v31 }
 0x130   :  { %v2157_v43 = vpop.eup %2156  ;;  %2176 = vrcp.f32 %v860_v37  ;;  %v858_v21 = vadd.f32 1.0, %v2155_v39  ;;  %v1524_v37 = vmul.f32 -1.442695, %v2811_v54 }
 0x131   :  { %v2159_v26 = vpop.eup %2158  ;;  %2178 = vrcp.f32 %v892_v15  ;;  %v1045_v44 = vmul.f32 %v2157_v43, %v2635_v48  ;;  %v2820_v48 = vadd.f32 %v2467_v34, %v2660_v40 }
 0x132   :  { %v2161_v30 = vpop.eup %2160  ;;  %2180 = vrcp.f32 %v858_v21  ;;  %v1077_v8 = vmul.f32 %v2159_v26, %v2639_v13  ;;  %v1526_v13 = vmul.f32 -1.442695, %v2797_v33 }
 0x133   :  { %v2163_v2 = vpop.eup %2162  ;;  %v1048_v18 = vmul.f32 %v2161_v30, %v2643_v19  ;;  %2182 = vpow2.f32 %v1549_v53  ;;  %v1556_v53 = vmul.f32 -1.442695, %v2820_v48 }
 0x134   :  { %v2165_v63 = vpop.eup %2164  ;;  %v1080_v46 = vmul.f32 %v2163_v2, %v2647_v59  ;;  %2184 = vpow2.f32 %v1522_v3 }
 0x135   :  { %v2167_v6 = vpop.eup %2166  ;;  %v1730_v19 = vpack.c.bf16 %v1048_v18, %v1047_v47  ;;  %v1046_v57 = vmul.f32 %v2165_v63, %v2656_v5  ;;  %2186 = vpow2.f32 %v1554_v29 }
 0x136   :  { %v2169_v24 = vpop.eup %2168  ;;  %v1810_v41 = vpack.c.bf16 %v1080_v46, %v1079_v61  ;;  %v1078_v55 = vmul.f32 %v2167_v6, %v2675_v20  ;;  %2188 = vpow2.f32 %v1520_v16  ;;  %v1558_v20 = vmul.f32 -1.442695, %v2804_v35 }
 0x137   :  { %v2171_v59 = vpop.eup %2170  ;;  %1858 = vst [vmem:[#allocation2 + $0x38] sm:$0xff] %v1730_v19   ;;  %v1725_v0 = vpack.c.bf16 %v1046_v57, %v1045_v44  ;;  %2190 = vpow2.f32 %v1552_v9  ;;  %v1051_v40 = vmul.f32 %v2169_v24, %v2680_v49  ;;  %v2836_v6 = vadd.f32 %v2663_v52, %v2467_v34  ;;  %v2947_v57 = vld [vmem:[#allocation5_spill] sm:$0xff] }
 0x138   :  { %v2173_v25 = vpop.eup %2172  ;;  %1874 = vst [vmem:[#allocation2 + $0xb8] sm:$0xff] %v1810_v41   ;;  %v1805_v5 = vpack.c.bf16 %v1078_v55, %v1077_v8  ;;  %2192 = vpow2.f32 %v1523_v56  ;;  %v1083_v43 = vmul.f32 %v2171_v59, %v2684_v11  ;;  %v2840_v24 = vadd.f32 %v2947_v57, %v2467_v34  ;;  %v2948_v8 = vld [vmem:[#allocation6_spill] sm:$0xff] }
 0x139   :  { %v2823_v10 = vpop.eup %2174  ;;  %1857 = vst [vmem:[#allocation2 + $0x30] sm:$0xff] %v1725_v0   ;;  %2194 = vpow2.f32 %v1555_v58  ;;  %v1049_v16 = vmul.f32 %v2173_v25, %v2688_v17  ;;  %v2844_v41 = vadd.f32 %v2467_v34, %v2948_v8 }
 0x13a   :  { %v2177_v31 = vpop.eup %2176  ;;  %1873 = vst [vmem:[#allocation2 + $0xb0] sm:$0xff] %v1805_v5   ;;  %2196 = vpow2.f32 %v1521_v32  ;;  %v1527_v5 = vmul.f32 -1.442695, %v2836_v6 }
 0x13b   :  { %v2179_v39 = vpop.eup %2178  ;;  %v1052_v15 = vmul.f32 %v2177_v31, %v2702_v45  ;;  %2198 = vpow2.f32 %v1553_v28 }
 0x13c   :  { %v2181_v3 = vpop.eup %2180  ;;  %v1084_v21 = vmul.f32 %v2179_v39, %v2718_v4  ;;  %2200 = vpow2.f32 %v1526_v13  ;;  %v2949_v13 = vld [vmem:[#allocation7_spill] sm:$0xff]  ;;  %v1559_v39 = vmul.f32 -1.442695, %v2840_v24 }
 0x13d   :  { %v2183_v29 = vpop.eup %2182  ;;  %v1740_v26 = vpack.c.bf16 %v1052_v15, %v1051_v40  ;;  %v1050_v9 = vmul.f32 %v2181_v3, %v2727_v60  ;;  %2202 = vpow2.f32 %v1558_v20  ;;  %v2849_v20 = vadd.f32 %v2467_v34, %v2949_v13 }
 0x13e   :  { %v2185_v56 = vpop.eup %2184  ;;  %v1820_v49 = vpack.c.bf16 %v1084_v21, %v1083_v43  ;;  %v890_v58 = vadd.f32 1.0, %v2183_v29  ;;  %2204 = vpow2.f32 %v1524_v37  ;;  %v1525_v40 = vmul.f32 -1.442695, %v2844_v41 }
 0x13f   :  { %v2187_v45 = vpop.eup %2186  ;;  %1860 = vst [vmem:[#allocation2 + $0x48] sm:$0xff] %v1740_v26   ;;  %v1735_v30 = vpack.c.bf16 %v1050_v9, %v1049_v16  ;;  %v863_v32 = vadd.f32 1.0, %v2185_v56  ;;  %2206 = vpow2.f32 %v1556_v53  ;;  %v2855_v15 = vadd.f32 %v2704_v7, %v2467_v34  ;;  %v2950_v16 = vld [vmem:[#allocation8_spill] sm:$0xff]  ;;  %v2951_v9 = vld [vmem:[#allocation9_spill] sm:$0xff] }
 0x140   :  { %v2189_v11 = vpop.eup %2188  ;;  %1876 = vst [vmem:[#allocation2 + $0xc8] sm:$0xff] %v1820_v49   ;;  %2208 = vrcp.f32 %v890_v58  ;;  %v895_v4 = vadd.f32 1.0, %v2187_v45  ;;  %v2859_v3 = vadd.f32 %v2706_v62, %v2467_v34  ;;  %v2863_v43 = vadd.f32 %v2467_v34, %v2711_v1  ;;  %v2952_v49 = vld [vmem:[#allocation10_spill] sm:$0xff] }
 0x141   :  { %v2191_v2 = vpop.eup %2190  ;;  %1859 = vst [vmem:[#allocation2 + $0x40] sm:$0xff] %v1735_v30   ;;  %2210 = vrcp.f32 %v863_v32  ;;  %v861_v17 = vadd.f32 1.0, %v2189_v11  ;;  %v2867_v21 = vadd.f32 %v2467_v34, %v2713_v36  ;;  %v1081_v26 = vmul.f32 %v2823_v10, %v2950_v16  ;;  %v2953_v30 = vld [vmem:[#allocation11_spill] sm:$0xff] }
 0x142   :  { %v2193_v47 = vpop.eup %2192  ;;  %2212 = vrcp.f32 %v895_v4  ;;  %v893_v60 = vadd.f32 1.0, %v2191_v2  ;;  %v2874_v56 = vadd.f32 %v2951_v9, %v2467_v34  ;;  %v1557_v1 = vmul.f32 -1.442695, %v2849_v20 }
 0x143   :  { %v2195_v18 = vpop.eup %2194  ;;  %2214 = vrcp.f32 %v861_v17  ;;  %v864_v63 = vadd.f32 1.0, %v2193_v47  ;;  %v2879_v58 = vadd.f32 %v2952_v49, %v2467_v34  ;;  %v1530_v10 = vmul.f32 -1.442695, %v2855_v15 }
 0x144   :  { %v2197_v61 = vpop.eup %2196  ;;  %2216 = vrcp.f32 %v893_v60  ;;  %v896_v46 = vadd.f32 1.0, %v2195_v18  ;;  %v1562_v4 = vmul.f32 -1.442695, %v2859_v3  ;;  %v1528_v2 = vmul.f32 -1.442695, %v2863_v43  ;;  %v2954_v60 = vld [vmem:[#allocation12_spill] sm:$0xff] }
 0x145   :  { %v2199_v44 = vpop.eup %2198  ;;  %2218 = vrcp.f32 %v864_v63  ;;  %v862_v19 = vadd.f32 1.0, %v2197_v61  ;;  %v1560_v17 = vmul.f32 -1.442695, %v2867_v21  ;;  %v1531_v47 = vmul.f32 -1.442695, %v2874_v56 }
 0x146   :  { %v2201_v55 = vpop.eup %2200  ;;  %2220 = vrcp.f32 %v896_v46  ;;  %v894_v59 = vadd.f32 1.0, %v2199_v44  ;;  %v1563_v44 = vmul.f32 -1.442695, %v2879_v58 }
 0x147   :  { %v2203_v0 = vpop.eup %2202  ;;  %2222 = vrcp.f32 %v862_v19  ;;  %v867_v28 = vadd.f32 1.0, %v2201_v55 }
 0x148   :  { %v2205_v25 = vpop.eup %2204  ;;  %2224 = vrcp.f32 %v894_v59  ;;  %v899_v52 = vadd.f32 1.0, %v2203_v0 }
 0x149   :  { %v2207_v31 = vpop.eup %2206  ;;  %v865_v37 = vadd.f32 1.0, %v2205_v25  ;;  %2226 = vrcp.f32 %v867_v28 }
 0x14a   :  { %v2209_v53 = vpop.eup %2208  ;;  %2228 = vrcp.f32 %v899_v52 }
 0x14b   :  { %v2211_v29 = vpop.eup %2210  ;;  %v1082_v7 = vmul.f32 %v2209_v53, %v2753_v42  ;;  %2230 = vrcp.f32 %v865_v37  ;;  %v2282_v42 = vld [vmem:[%s2936_s2] ss:$0 sm:$0xff]  ;;  %s2307_s2 = smov [#allocation2]  }
 0x14c   :  { %v2213_v62 = vpop.eup %2212  ;;  %2232 = vpow2.f32 %v1527_v5  ;;  %v2886_v32 = vadd.f32 %v2282_v42, %v2953_v30  ;;  %v2893_v18 = vadd.f32 %v2282_v42, %v2954_v60  ;;  %v1055_v61 = vmul.f32 %v2211_v29, %v2757_v14  ;;  %s1422_s26 = sshll.u32 %s2307_s2, 4  ;;  %s1423_s26 = int_to_ptr.vmem [resolvable:$true] %s1422_s26 }
 0x14d   :  { %v2215_v36 = vpop.eup %2214  ;;  %v1815_v45 = vpack.c.bf16 %v1082_v7, %v1081_v26  ;;  %2234 = vpow2.f32 %v1559_v39  ;;  %v1087_v57 = vmul.f32 %v2213_v62, %v2761_v12  ;;  %s2283_s27 = scalar_lea.vmem %s1423_s26, 4096  ;;  %p2288_p1 = scmp.lt.s32.totalorder %s1423_s26, %s1423_s26 }
 0x14e   :  { %v2217_v11 = vpop.eup %2216  ;;  %2236 = vpow2.f32 %v1525_v40  ;;  %v1529_v55 = vmul.f32 -1.442695, %v2886_v32  ;;  %v1053_v0 = vmul.f32 %v2215_v36, %v2765_v50  ;;  %v897_v50 = vadd.f32 1.0, %v2207_v31  ;;  %p2284_p0 = scmp.ne.s32.totalorder %s1423_s26, %s2283_s27  ;;  %p2289_p2 = scmp.lt.s32.totalorder %s2283_s27, %s2283_s27 }
 0x14f   :  { %v2219_v34 = vpop.eup %2218  ;;  %1875 = vst [vmem:[#allocation2 + $0xc0] sm:$0xff] %v1815_v45   ;;  %2238 = vpow2.f32 %v1557_v1  ;;  %v1085_v14 = vmul.f32 %v2217_v11, %v2769_v38 }
 0x150   :  { %v2221_v63 = vpop.eup %2220  ;;  %v1056_v46 = vmul.f32 %v2219_v34, %v2773_v22  ;;  %2240 = vpow2.f32 %v1530_v10  ;;  %p2290_p3 = por %p2289_p2, %p2288_p1 }
 0x151   :  { %v2223_v19 = vpop.eup %2222  ;;  %v1088_v8 = vmul.f32 %v2221_v63, %v2777_v23  ;;  %2242 = vpow2.f32 %v1562_v4  ;;  %v1561_v23 = vmul.f32 -1.442695, %v2893_v18 }
 0x152   :  { %v2225_v59 = vpop.eup %2224  ;;  %v1750_v28 = vpack.c.bf16 %v1056_v46, %v1055_v61  ;;  %v1054_v25 = vmul.f32 %v2223_v19, %v2781_v27  ;;  %2244 = vpow2.f32 %v1528_v2  ;;  %p2291_p4 = pnand %p2290_p3, %p2284_p0 }
 0x153   :  { %v1830_v22 = vpack.c.bf16 %v1088_v8, %v1087_v57  ;;  %v1086_v52 = vmul.f32 %v2225_v59, %v2793_v51  ;;  %v2227_v5 = vpop.eup %2226  ;;  %2246 = vpow2.f32 %v1560_v17 }
 0x154   :  { %1862 = vst [vmem:[#allocation2 + $0x58] sm:$0xff] %v1750_v28   ;;  %v1745_v12 = vpack.c.bf16 %v1054_v25, %v1053_v0  ;;  %v2229_v13 = vpop.eup %2228  ;;  %2248 = vpow2.f32 %v1531_v47  ;;  %v1059_v61 = vmul.f32 %v2227_v5, %v2797_v33 }
 0x155   :  { %1878 = vst [vmem:[#allocation2 + $0xd8] sm:$0xff] %v1830_v22   ;;  %v1825_v37 = vpack.c.bf16 %v1086_v52, %v1085_v14  ;;  %v2231_v39 = vpop.eup %2230  ;;  %2250 = vpow2.f32 %v1563_v44  ;;  %v1091_v19 = vmul.f32 %v2229_v13, %v2804_v35 }
 0x156   :  { %1861 = vst [vmem:[#allocation2 + $0x50] sm:$0xff] %v1745_v12   ;;  %v2233_v27 = vpop.eup %2232  ;;  %2252 = vpow2.f32 %v1529_v55  ;;  %v1057_v55 = vmul.f32 %v2231_v39, %v2811_v54 }
 0x157   :  { %1877 = vst [vmem:[#allocation2 + $0xd0] sm:$0xff] %v1825_v37   ;;  %v2235_v38 = vpop.eup %2234  ;;  %v868_v51 = vadd.f32 1.0, %v2233_v27  ;;  %2254 = vpow2.f32 %v1561_v23 }
 0x158   :  { %v2237_v40 = vpop.eup %2236  ;;  %2256 = vrcp.f32 %v897_v50  ;;  %v900_v53 = vadd.f32 1.0, %v2235_v38 }
 0x159   :  { %v2239_v29 = vpop.eup %2238  ;;  %2258 = vrcp.f32 %v868_v51  ;;  %v866_v16 = vadd.f32 1.0, %v2237_v40 }
 0x15a   :  { %v2241_v26 = vpop.eup %2240  ;;  %2260 = vrcp.f32 %v900_v53  ;;  %v898_v7 = vadd.f32 1.0, %v2239_v29 }
 0x15b   :  { %v2243_v31 = vpop.eup %2242  ;;  %2262 = vrcp.f32 %v866_v16  ;;  %v871_v9 = vadd.f32 1.0, %v2241_v26 }
 0x15c   :  { %v2245_v62 = vpop.eup %2244  ;;  %2264 = vrcp.f32 %v898_v7  ;;  %v903_v1 = vadd.f32 1.0, %v2243_v31 }
 0x15d   :  { %v2247_v49 = vpop.eup %2246  ;;  %2266 = vrcp.f32 %v871_v9  ;;  %v869_v36 = vadd.f32 1.0, %v2245_v62 }
 0x15e   :  { %v2249_v45 = vpop.eup %2248  ;;  %2268 = vrcp.f32 %v903_v1  ;;  %v901_v10 = vadd.f32 1.0, %v2247_v49 }
 0x15f   :  { %v2251_v42 = vpop.eup %2250  ;;  %2270 = vrcp.f32 %v869_v36  ;;  %v872_v30 = vadd.f32 1.0, %v2249_v45 }
 0x160   :  { %v2253_v11 = vpop.eup %2252  ;;  %2272 = vrcp.f32 %v901_v10  ;;  %v904_v4 = vadd.f32 1.0, %v2251_v42 }
 0x161   :  { %v2255_v2 = vpop.eup %2254  ;;  %2274 = vrcp.f32 %v872_v30  ;;  %v870_v34 = vadd.f32 1.0, %v2253_v11 }
 0x162   :  { %v2257_v17 = vpop.eup %2256  ;;  %2276 = vrcp.f32 %v904_v4  ;;  %v902_v47 = vadd.f32 1.0, %v2255_v2 }
 0x163   :  { %v2259_v60 = vpop.eup %2258  ;;  %2278 = vrcp.f32 %v870_v34  ;;  %v1089_v25 = vmul.f32 %v2257_v17, %v2820_v48 }
 0x164   :  { %v2261_v63 = vpop.eup %2260  ;;  %v1060_v46 = vmul.f32 %v2259_v60, %v2836_v6  ;;  %2280 = vrcp.f32 %v902_v47 }
 0x165   :  { %v2263_v44 = vpop.eup %2262  ;;  %v1092_v57 = vmul.f32 %v2261_v63, %v2840_v24 }
 0x166   :  { %v2265_v8 = vpop.eup %2264  ;;  %v1760_v59 = vpack.c.bf16 %v1060_v46, %v1059_v61  ;;  %v1058_v0 = vmul.f32 %v2263_v44, %v2844_v41 }
 0x167   :  { %v2267_v28 = vpop.eup %2266  ;;  %v1840_v14 = vpack.c.bf16 %v1092_v57, %v1091_v19  ;;  %v1090_v33 = vmul.f32 %v2265_v8, %v2849_v20 }
 0x168   :  { %v2269_v22 = vpop.eup %2268  ;;  %1864 = vst [vmem:[#allocation2 + $0x68] sm:$0xff] %v1760_v59   ;;  %v1755_v6 = vpack.c.bf16 %v1058_v0, %v1057_v55  ;;  %v1063_v12 = vmul.f32 %v2267_v28, %v2855_v15 }
 0x169   :  { %v2271_v52 = vpop.eup %2270  ;;  %1880 = vst [vmem:[#allocation2 + $0xe8] sm:$0xff] %v1840_v14   ;;  %v1835_v35 = vpack.c.bf16 %v1090_v33, %v1089_v25  ;;  %v1095_v48 = vmul.f32 %v2269_v22, %v2859_v3 }
 0x16a   :  { %v2273_v5 = vpop.eup %2272  ;;  %1863 = vst [vmem:[#allocation2 + $0x60] sm:$0xff] %v1755_v6   ;;  %v1061_v37 = vmul.f32 %v2271_v52, %v2863_v43 }
 0x16b   :  { %v2275_v24 = vpop.eup %2274  ;;  %1879 = vst [vmem:[#allocation2 + $0xe0] sm:$0xff] %v1835_v35   ;;  %v1093_v27 = vmul.f32 %v2273_v5, %v2867_v21 }
 0x16c   :  { %v2277_v54 = vpop.eup %2276  ;;  %v1064_v41 = vmul.f32 %v2275_v24, %v2874_v56 }
 0x16d   :  { %v2279_v23 = vpop.eup %2278  ;;  %v1096_v20 = vmul.f32 %v2277_v54, %v2879_v58 }
 0x16e   :  { %v2281_v13 = vpop.eup %2280  ;;  %v1770_v50 = vpack.c.bf16 %v1064_v41, %v1063_v12  ;;  %v1062_v39 = vmul.f32 %v2279_v23, %v2886_v32 }
 0x16f   :  { %v1850_v38 = vpack.c.bf16 %v1096_v20, %v1095_v48  ;;  %v1094_v15 = vmul.f32 %v2281_v13, %v2893_v18 }
 0x170   :  { %1866 = vst [vmem:[#allocation2 + $0x78] sm:$0xff] %v1770_v50   ;;  %v1765_v56 = vpack.c.bf16 %v1062_v39, %v1061_v37 }
 0x171   :  { %1882 = vst [vmem:[#allocation2 + $0xf8] sm:$0xff] %v1850_v38   ;;  %v1845_v51 = vpack.c.bf16 %v1094_v15, %v1093_v27 }
 0x172   :  { %1865 = vst [vmem:[#allocation2 + $0x70] sm:$0xff] %v1765_v56  }
 0x173   :  { %1881 = vst [vmem:[#allocation2 + $0xf0] sm:$0xff] %v1845_v51  }
 0x174   :  { %2294 = shalt.err (!%p2291_p4)
}
 0x175   :  { %s2295_s30 = scalar_lea.hbm %s2937_s3, 4096 }
 0x176   :  { %p2296_p5 = scmp.ne.s32.totalorder %s2937_s3, %s2295_s30  ;;  %p2299_p6 = scmp.lt.u32.totalorder %s2295_s30, %s2937_s3 }
 0x178   :  { %p2301_p7 = pnand %p2299_p6, %p2296_p5 }
 0x17a   :  { %2304 = shalt.err (!%p2301_p7)
}
 0x17b   :  { %s2308_s8 = smov 64   ;;  %s2309_s9 = smov 4  }
 0x17c   :  { %1428 = dma.vmem_to_hbm [thread:$0]  %s1423_s26, 4096, %s2937_s3, [#allocation3], %s2308_s8, %s2308_s8, %s2309_s9  }
 0x17d   :  { %2305 = dma.done.wait [#allocation3], 4096  }
 0x17e   :  { %2306 = vsyncadd [#allocation3], 4294963200 }
 0x17f   :  { %1432 = vsyncpa [#allocation3], 1 }

</bundles_post_ra>
